<compile_context>
chip_gen: v6e
topology: v6e:2x2x1
jax: 0.10.0
libtpu: 0.0.40
codegen_flags: <defaults>
</compile_context>

<pallas_src>
import functools

import jax
import jax.numpy as jnp
from jax.experimental import pallas as pl
from jax.experimental.pallas import tpu as pltpu

ALPHA = 0.25
GAMMA = 2.0

_LANES = 128
_MAX_TILE_ROWS = 4096   # 4096 x 128 x 4B = 2 MiB per f32 input tile
_SUB_ROWS = 512         # in-kernel accumulation sub-slab (256 KiB f32 temporaries)


def _focal_loss_kernel(x_ref, t_ref, out_ref, *, alpha, gamma, n_valid,
                       tile_rows, sub_rows, needs_mask, binary_targets):
    i = pl.program_id(0)
    n_sub = tile_rows // sub_rows
    base = i * (tile_rows * _LANES)   # flat element offset of this block

    def block_sum(masked):
        def body(s, acc):
            r0 = pl.multiple_of(s * sub_rows, sub_rows)
            x = x_ref[pl.ds(r0, sub_rows), :].astype(jnp.float32)
            t = t_ref[pl.ds(r0, sub_rows), :].astype(jnp.float32)

            # Numerically-stable BCE-with-logits
            # (== F.binary_cross_entropy_with_logits, reduction='none'):
            #   bce = max(x, 0) - x*t + log1p(exp(-|x|))
            z = jnp.exp(-jnp.abs(x))
            bce = jnp.maximum(x, 0.0) - x * t + jnp.log1p(z)

            if binary_targets:
                # pt = sigmoid(x) if t == 1 else sigmoid(-x); exact for hard
                # {0,1} targets.  Saves one exp per element; vrcp is cheap EUP.
                num = jnp.where(t > 0.5,
                                jnp.where(x >= 0.0, 1.0, z),
                                jnp.where(x >= 0.0, z, 1.0))
                pt = num * pl.reciprocal(1.0 + z, approx=True)
            else:
                pt = jnp.exp(-bce)   # soft-label-safe path (matches the module)

            omp = 1.0 - pt
            if gamma == 2.0:
                mod = omp * omp              # avoid lax.pow (log+exp on EUP)
            else:
                mod = omp ** jnp.float32(gamma)
            f = jnp.float32(alpha) * mod * bce

            if masked:
                # Mask padded / out-of-bounds tail elements of the last block.
                rows = jax.lax.broadcasted_iota(jnp.int32, (sub_rows, _LANES), 0)
                lanes = jax.lax.broadcasted_iota(jnp.int32, (sub_rows, _LANES), 1)
                flat = base + (r0 + rows) * _LANES + lanes
                f = jnp.where(flat < n_valid, f, 0.0)

            # (sub_rows, 128) -> (sub_rows//8, 8, 128); vreg-granular VPU adds.
            return acc + jnp.sum(f.reshape(sub_rows // 8, 8, _LANES), axis=0)

        init = jnp.zeros((8, _LANES), jnp.float32)
        if n_sub == 1:
            return body(0, init)
        return jax.lax.fori_loop(0, n_sub, body, init)

    if needs_mask:
        last = pl.num_programs(0) - 1

        @pl.when(i != last)
        def _():
            out_ref[...] = block_sum(False)

        @pl.when(i == last)
        def _():
            out_ref[...] = block_sum(True)
    else:
        out_ref[...] = block_sum(False)


def focal_loss(inputs, targets, *, alpha=ALPHA, gamma=GAMMA, reduction="mean",
               binary_targets=False):
    """Focal loss. inputs/targets: any (identical) shape, any float dtype."""
    assert inputs.shape == targets.shape
    if reduction not in ("mean", "sum"):
        # TODO(synk): reduction='none' (elementwise output) not implemented in
        # the Pallas path; only 'mean' and 'sum' are supported.
        raise NotImplementedError("focal_loss: reduction must be 'mean' or 'sum'")

    n_valid = int(inputs.size)

    # Keep the original dtype through the BlockSpec; cast to f32 in-kernel.
    x = jnp.ravel(inputs)
    t = jnp.ravel(targets)

    # Sublane packing: narrow dtypes pack 2/4 rows per sublane (bf16 -> 16,
    # int8/fp8 -> 32); align the padded row count to that factor.
    itemsize = jnp.dtype(inputs.dtype).itemsize
    row_align = 8 * max(1, 4 // max(1, itemsize))

    rows_needed = max(1, pl.cdiv(n_valid, _LANES))
    rows_padded = pl.cdiv(rows_needed, row_align) * row_align
    pad = rows_padded * _LANES - n_valid
    if pad:
        # Pad only to the (row_align x 128) granularity (< 8 KiB of zeros) so
        # lane-aligned inputs never pay an extra HBM copy; never pad to a full
        # tile -- the last grid block is allowed to be partial.
        x = jnp.pad(x, (0, pad))
        t = jnp.pad(t, (0, pad))

    x2 = x.reshape(rows_padded, _LANES)
    t2 = t.reshape(rows_padded, _LANES)

    # Tile selection: as large as possible (up to 4096 rows = 2 MiB f32/input),
    # always a multiple of the in-kernel sub-slab so the fori_loop divides it,
    # and never taller than the (padded) array.
    if rows_padded <= _SUB_ROWS:
        sub_rows = tile_rows = rows_padded
    else:
        sub_rows = _SUB_ROWS
        tile_rows = min(_MAX_TILE_ROWS, (rows_padded // _SUB_ROWS) * _SUB_ROWS)

    num_blocks = pl.cdiv(rows_padded, tile_rows)
    # Only the last block can contain padded zeros or partial-block garbage.
    needs_mask = (num_blocks * tile_rows * _LANES) != n_valid

    kernel = functools.partial(
        _focal_loss_kernel,
        alpha=float(alpha),
        gamma=float(gamma),
        n_valid=n_valid,
        tile_rows=tile_rows,
        sub_rows=sub_rows,
        needs_mask=needs_mask,
        binary_targets=binary_targets,
    )

    tile_spec = pl.BlockSpec((tile_rows, _LANES), lambda i: (i, 0))
    partials = pl.pallas_call(
        kernel,
        out_shape=jax.ShapeDtypeStruct((num_blocks, 8, _LANES), jnp.float32),
        grid_spec=pltpu.PrefetchScalarGridSpec(
            num_scalar_prefetch=0,
            grid=(num_blocks,),
            in_specs=[tile_spec, tile_spec],
            out_specs=pl.BlockSpec((None, 8, _LANES), lambda i: (i, 0, 0)),
        ),
        compiler_params=pltpu.CompilerParams(
            dimension_semantics=("parallel",),
        ),
    )(x2, t2)

    # Final cross-lane/sublane/block reduction (+ mean) is a tiny XLA reduce.
    total = jnp.sum(partials)
    if reduction == "mean":
        return total / jnp.float32(n_valid)
    return total


def _focal_loss_ref(inputs, targets, alpha=ALPHA, gamma=GAMMA):
    x = inputs.astype(jnp.float32)
    t = targets.astype(jnp.float32)
    bce = jnp.maximum(x, 0.0) - x * t + jnp.log1p(jnp.exp(-jnp.abs(x)))
    pt = jnp.exp(-bce)
    return jnp.mean(alpha * (1.0 - pt) ** gamma * bce)


if __name__ == "__main__":
    key = jax.random.PRNGKey(0)
    k1, k2, k3, k4 = jax.random.split(key, 4)

    # NCHW-shaped logits and binary targets, like a detection/segmentation head.
    x = jax.random.normal(k1, (2, 4, 16, 16), dtype=jnp.float32)
    tgt = (jax.random.uniform(k2, (2, 4, 16, 16)) > 0.5).astype(jnp.float32)

    loss = focal_loss(x, tgt)
    jax.block_until_ready(loss)
    ref = _focal_loss_ref(x, tgt)
    assert jnp.allclose(loss, ref, rtol=1e-5, atol=1e-6), (loss, ref)

    # Lane-unaligned shape exercises the padded-tail mask / partial-block path.
    x_odd = jax.random.normal(k3, (3, 5, 7, 11), dtype=jnp.float32)
    t_odd = (jax.random.uniform(k4, (3, 5, 7, 11)) > 0.5).astype(jnp.float32)
    loss_odd = focal_loss(x_odd, t_odd)
    jax.block_until_ready(loss_odd)
    ref_odd = _focal_loss_ref(x_odd, t_odd)
    assert jnp.allclose(loss_odd, ref_odd, rtol=1e-5, atol=1e-6), (loss_odd, ref_odd)

    # bf16 inputs (halved HBM bytes; exercises the 16-row sublane alignment).
    x_bf = x.astype(jnp.bfloat16)
    t_bf = tgt.astype(jnp.bfloat16)
    loss_bf = focal_loss(x_bf, t_bf)
    jax.block_until_ready(loss_bf)
    ref_bf = _focal_loss_ref(x_bf, t_bf)
    assert jnp.allclose(loss_bf, ref_bf, rtol=1e-5, atol=1e-6), (loss_bf, ref_bf)

    # Binary-target fast path (2 transcendentals + approx vrcp instead of 3).
    loss_bin = focal_loss(x, tgt, binary_targets=True)
    jax.block_until_ready(loss_bin)
    assert jnp.allclose(loss_bin, ref, rtol=2e-3, atol=1e-5), (loss_bin, ref)

    print("KERNEL_OK")
</pallas_src>

<mosaic_0001>
module attributes {stable_mosaic.version = 11 : i64} {
  func.func @_focal_loss_kernel(%arg0: i32, %arg1: memref<16x128xf32, #tpu.memory_space<vmem>>, %arg2: memref<16x128xf32, #tpu.memory_space<vmem>>, %arg3: memref<1x8x128xf32, #tpu.memory_space<vmem>>) attributes {dimension_semantics = [#tpu.dimension_semantics<parallel>], iteration_bounds = array<i64: 1>, scalar_prefetch = 0 : i64, scratch_operands = 0 : i64, tpu.core_type = #tpu.core_type<tc>, window_params = [{transform_indices = @transform_0, window_bounds = array<i64: 16, 128>}, {transform_indices = @transform_1, window_bounds = array<i64: 16, 128>}, {transform_indices = @transform_2, window_bounds = array<i64: 1, 8, 128>}]} {
    %cst = arith.constant 0.000000e+00 : f32
    %0 = vector.broadcast %cst : f32 to vector<8x128xf32>
    %c0_i32 = arith.constant 0 : i32
    %1 = tpu.assume_multiple %c0_i32, 16 : i32
    %2 = arith.index_cast %1 : i32 to index
    %c0 = arith.constant 0 : index
    %3 = vector.load %arg1[%2, %c0] : memref<16x128xf32, #tpu.memory_space<vmem>>, vector<16x128xf32>
    %4 = arith.index_cast %1 : i32 to index
    %c0_0 = arith.constant 0 : index
    %5 = vector.load %arg2[%4, %c0_0] : memref<16x128xf32, #tpu.memory_space<vmem>>, vector<16x128xf32>
    %6 = math.absf %3 : vector<16x128xf32>
    %cst_1 = arith.constant 0.000000e+00 : f32
    %7 = vector.broadcast %cst_1 : f32 to vector<16x128xf32>
    %8 = arith.subf %7, %6 : vector<16x128xf32>
    %9 = math.exp %8 : vector<16x128xf32>
    %cst_2 = arith.constant 0.000000e+00 : f32
    %10 = vector.broadcast %cst_2 : f32 to vector<16x128xf32>
    %11 = arith.maximumf %3, %10 : vector<16x128xf32>
    %12 = arith.mulf %3, %5 : vector<16x128xf32>
    %13 = arith.subf %11, %12 : vector<16x128xf32>
    %14 = math.log1p %9 : vector<16x128xf32>
    %15 = arith.addf %13, %14 : vector<16x128xf32>
    %cst_3 = arith.constant 0.000000e+00 : f32
    %16 = vector.broadcast %cst_3 : f32 to vector<16x128xf32>
    %17 = arith.subf %16, %15 : vector<16x128xf32>
    %18 = math.exp %17 : vector<16x128xf32>
    %cst_4 = arith.constant 1.000000e+00 : f32
    %19 = vector.broadcast %cst_4 : f32 to vector<16x128xf32>
    %20 = arith.subf %19, %18 : vector<16x128xf32>
    %21 = arith.mulf %20, %20 : vector<16x128xf32>
    %cst_5 = arith.constant 2.500000e-01 : f32
    %22 = vector.broadcast %cst_5 : f32 to vector<16x128xf32>
    %23 = arith.mulf %22, %21 : vector<16x128xf32>
    %24 = arith.mulf %23, %15 : vector<16x128xf32>
    %25 = vector.shape_cast %24 : vector<16x128xf32> to vector<2x8x128xf32>
    %cst_6 = arith.constant dense<0.000000e+00> : vector<8x128xf32>
    %26 = vector.multi_reduction <add>, %25, %cst_6 [0] : vector<2x8x128xf32> to vector<8x128xf32>
    %27 = arith.addf %0, %26 : vector<8x128xf32>
    %c0_7 = arith.constant 0 : index
    %c0_8 = arith.constant 0 : index
    %c0_9 = arith.constant 0 : index
    %28 = vector.load %arg3[%c0_7, %c0_8, %c0_9] : memref<1x8x128xf32, #tpu.memory_space<vmem>>, vector<1x8x128xf32>
    %29 = vector.shape_cast %28 : vector<1x8x128xf32> to vector<8x128xf32>
    %30 = vector.shape_cast %27 : vector<8x128xf32> to vector<1x8x128xf32>
    tpu.vector_store %arg3[%c0_7, %c0_8, %c0_9], %30 {strides = array<i32>} : memref<1x8x128xf32, #tpu.memory_space<vmem>>, vector<1x8x128xf32>,
    return
  }
  func.func @transform_0(%arg0: i32) -> (i32, i32) {
    %c0_i32 = arith.constant 0 : i32
    %c0_i32_0 = arith.constant 0 : i32
    return %arg0, %c0_i32 : i32, i32
  }
  func.func @transform_1(%arg0: i32) -> (i32, i32) {
    %c0_i32 = arith.constant 0 : i32
    %c0_i32_0 = arith.constant 0 : i32
    return %arg0, %c0_i32 : i32, i32
  }
  func.func @transform_2(%arg0: i32) -> (i32, i32, i32) {
    %c0_i32 = arith.constant 0 : i32
    %c0_i32_0 = arith.constant 0 : i32
    %c0_i32_1 = arith.constant 0 : i32
    return %arg0, %c0_i32, %c0_i32_0 : i32, i32, i32
  }
}

</mosaic_0001>

<bundles_post_ra>
// kernel: tpu_custom_call.1
= control target key start
LH: loop header
LB: loop body
LE: loop exit
PB: predicated region body
PF: predicated region fallthrough
CT: control target
= control target key end

     0   :  { %7 = vsyncpa [#allocation3], 0  ;;  %s223_s0 = inlined_call_operand.hbm [shape: f32[16,128], index: 0, kind: input, shape index: {}]   ;;  %s224_s1 = inlined_call_operand.hbm [shape: f32[16,128], index: 1, kind: input, shape index: {}]   ;;  %s225_s2 = inlined_call_operand.hbm [shape: f32[1,8,128], index: 2, kind: output, shape index: {}]  }
   0x1   :  { %8 = vsyncpa [#allocation6], 0 }
   0x2   :  { %9 = vsyncpa [#allocation4], 0  ;;  %s194_s9 = smov [#allocation2]  }
   0x3   :  { %s15_s10 = sshll.u32 %s194_s9, 4  ;;  %s16_s10 = int_to_ptr.vmem [resolvable:$true] %s15_s10 }
   0x4   :  { %s136_s11 = scalar_lea.vmem %s16_s10, 256  ;;  %p141_p1 = scmp.lt.s32.totalorder %s16_s10, %s16_s10 }
   0x5   :  { %p137_p0 = scmp.ne.s32.totalorder %s16_s10, %s136_s11  ;;  %p142_p2 = scmp.lt.s32.totalorder %s136_s11, %s136_s11 }
   0x7   :  { %p143_p3 = por %p142_p2, %p141_p1 }
   0x9   :  { %p144_p4 = pnand %p143_p3, %p137_p0 }
   0xb   :  { %147 = shalt.err (!%p144_p4)
}
   0xc   :  { %s195_s12 = smov 128   ;;  %s196_s13 = smov 8  }
   0xd   :  { %21 = dma.hbm_to_vmem [thread:$0]  %s223_s0, 256, %s16_s10, [#allocation3], %s195_s12, %s195_s12, %s196_s13  }
   0xe   :  { %s197_s16 = smov [#allocation5]  }
   0xf   :  { %s27_s17 = sshll.u32 %s197_s16, 4  ;;  %s28_s17 = int_to_ptr.vmem [resolvable:$true] %s27_s17 }
  0x10   :  { %s156_s18 = scalar_lea.vmem %s28_s17, 256  ;;  %p161_p6 = scmp.lt.s32.totalorder %s28_s17, %s28_s17 }
  0x11   :  { %p157_p5 = scmp.ne.s32.totalorder %s28_s17, %s156_s18  ;;  %p162_p7 = scmp.lt.s32.totalorder %s156_s18, %s156_s18 }
  0x13   :  { %p163_p8 = por %p162_p7, %p161_p6 }
  0x15   :  { %p164_p9 = pnand %p163_p8, %p157_p5 }
  0x17   :  { %167 = shalt.err (!%p164_p9)
}
  0x18   :  { %33 = dma.hbm_to_vmem [thread:$0]  %s224_s1, 256, %s28_s17, [#allocation6], %s195_s12, %s195_s12, %s196_s13  }
  0x19   :  { %188 = dma.done.wait [#allocation3], 256  }
  0x1a   :  { %189 = vsyncadd [#allocation3], 4294967040 }
  0x1b   :  { %190 = dma.done.wait [#allocation6], 256  }
  0x1c   :  { %191 = vsyncadd [#allocation6], 4294967040  ;;  %v40_v0 = vld [vmem:[#allocation2] sm:$0xff]  ;;  %v41_v1 = vld [vmem:[#allocation2 + $0x8] sm:$0xff]  ;;  %s198_s0 = smov [#allocation7]  }
  0x1d   :  { %v44_v2 = vand.u32 2147483647, %v40_v0  ;;  %v45_v3 = vand.u32 2147483647, %v41_v1  ;;  %v42_v14 = vld [vmem:[#allocation5] sm:$0xff]  ;;  %v43_v15 = vld [vmem:[#allocation5 + $0x8] sm:$0xff] }
  0x1e   :  { %v52_v17 = vmax.f32 %v40_v0, 0.0  ;;  %v54_v18 = vmul.f32 %v42_v14, %v40_v0  ;;  %v53_v21 = vmax.f32 %v41_v1, 0.0  ;;  %v55_v22 = vmul.f32 %v43_v15, %v41_v1  ;;  %s101_s1 = sshll.u32 %s198_s0, 4  ;;  %s102_s1 = int_to_ptr.vmem [resolvable:$true] %s101_s1 }
  0x1f   :  { %v46_v4 = vsub.f32 0.0, %v44_v2  ;;  %v47_v5 = vsub.f32 0.0, %v45_v3  ;;  %s168_s21 = scalar_lea.vmem %s102_s1, 128  ;;  %p173_p11 = scmp.lt.s32.totalorder %s102_s1, %s102_s1 }
  0x20   :  { %v56_v26 = vsub.f32 %v52_v17, %v54_v18  ;;  %v57_v29 = vsub.f32 %v53_v21, %v55_v22  ;;  %p169_p10 = scmp.ne.s32.totalorder %s102_s1, %s168_s21  ;;  %p174_p12 = scmp.lt.s32.totalorder %s168_s21, %s168_s21 }
  0x21   :  { %v48_v6 = vmul.f32 1.442695, %v46_v4  ;;  %v50_v7 = vmul.f32 1.442695, %v47_v5 }
  0x22   :  { %p175_p13 = por %p174_p12, %p173_p11 }
  0x23   :  { %116 = vpow2.f32 %v48_v6 }
  0x24   :  { %118 = vpow2.f32 %v50_v7  ;;  %p176_p0 = pnand %p175_p13, %p169_p10 }
  0x30   :  { %v117_v8 = vpop.eup %116 }
  0x31   :  { %v119_v9 = vpop.eup %118  ;;  %v58_v10 = vadd.f32 1.0, %v117_v8  ;;  %v61_v12 = vmul.f32 -0.5, %v117_v8  ;;  %v64_v19 = vand.u32 2147483647, %v117_v8 }
  0x32   :  { %v67_v11 = vadd.f32 1.0, %v119_v9  ;;  %v70_v13 = vmul.f32 -0.5, %v119_v9  ;;  %v73_v23 = vand.u32 2147483647, %v119_v9 }
  0x33   :  { %120 = vlog2.f32 %v58_v10  ;;  %v62_v16 = vadd.f32 1.0, %v61_v12  ;;  %vm65_vm0 = vcmp.lt.f32.partialorder %v64_v19, 0.0004427343 }
  0x34   :  { %122 = vlog2.f32 %v67_v11  ;;  %v71_v20 = vadd.f32 1.0, %v70_v13  ;;  %vm74_vm1 = vcmp.lt.f32.partialorder %v73_v23, 0.0004427343 }
  0x35   :  { %v63_v24 = vmul.f32 %v117_v8, %v62_v16 }
  0x36   :  { %v72_v27 = vmul.f32 %v119_v9, %v71_v20 }
  0x40   :  { %v121_v25 = vpop.eup %120 }
  0x41   :  { %v123_v28 = vpop.eup %122  ;;  %v60_v30 = vmul.f32 0.6931472, %v121_v25 }
  0x42   :  { %v69_v31 = vmul.f32 0.6931472, %v123_v28 }
  0x43   :  { %v66_v32 = vsel %vm65_vm0, %v63_v24, %v60_v30 }
  0x44   :  { %v75_v33 = vsel %vm74_vm1, %v72_v27, %v69_v31  ;;  %v76_v34 = vadd.f32 %v66_v32, %v56_v26 }
  0x45   :  { %v77_v35 = vadd.f32 %v75_v33, %v57_v29 }
  0x46   :  { %v78_v36 = vsub.f32 0.0, %v76_v34 }
  0x47   :  { %v79_v37 = vsub.f32 0.0, %v77_v35 }
  0x48   :  { %v80_v38 = vmul.f32 1.442695, %v78_v36 }
  0x49   :  { %v82_v39 = vmul.f32 1.442695, %v79_v37 }
  0x4a   :  { %124 = vpow2.f32 %v80_v38 }
  0x4b   :  { %126 = vpow2.f32 %v82_v39 }
  0x57   :  { %v125_v40 = vpop.eup %124 }
  0x58   :  { %v127_v41 = vpop.eup %126  ;;  %v84_v42 = vsub.f32 1.0, %v125_v40 }
  0x59   :  { %v85_v43 = vsub.f32 1.0, %v127_v41 }
  0x5a   :  { %v86_v44 = vmul.f32 %v84_v42, %v84_v42 }
  0x5b   :  { %v87_v45 = vmul.f32 %v85_v43, %v85_v43 }
  0x5c   :  { %v88_v46 = vmul.f32 0.25, %v86_v44 }
  0x5d   :  { %v89_v47 = vmul.f32 0.25, %v87_v45 }
  0x5e   :  { %v90_v48 = vmul.f32 %v88_v46, %v76_v34 }
  0x5f   :  { %v91_v49 = vmul.f32 %v89_v47, %v77_v35 }
  0x61   :  { %v92_v50 = vadd.f32 %v91_v49, %v90_v48 }
  0x63   :  { %94 = vst [vmem:[#allocation7] sm:$0xff] %v92_v50 }
  0x64   :  { %179 = shalt.err (!%p176_p0)
}
  0x65   :  { %104 = dma.vmem_to_hbm [thread:$0]  %s102_s1, 128, %s225_s2, [#allocation4]  }
  0x66   :  { %192 = dma.done.wait [#allocation4], 128  }
  0x67   :  { %193 = vsyncadd [#allocation4], 4294967168 }
  0x68   :  { %108 = vsyncpa [#allocation3], 1 }
  0x69   :  { %109 = vsyncpa [#allocation6], 1 }
  0x6a   :  { %110 = vsyncpa [#allocation4], 1 }

</bundles_post_ra>
